<compile_context>
chip_gen: v5e
topology: v5e:2x2
jax: 0.10.0
libtpu: 0.0.40
codegen_flags: <defaults>
</compile_context>

<pallas_src>
import functools

import jax
import jax.numpy as jnp
import numpy as np
from jax.experimental import pallas as pl
from jax.experimental.pallas import tpu as pltpu

EPS = 1e-5

_ACT = {
    'relu': lambda x: jnp.maximum(x, 0.0),
    'tanh': jnp.tanh,
    'sin': jnp.sin,
    'sigmoid': jax.nn.sigmoid,
    'none': lambda x: x,
    'exp': jnp.exp,
    'erf': jax.scipy.special.erf,
}


def _round_up(x, m):
    return ((x + m - 1) // m) * m


def _vmem_capacity_bytes():
    try:
        return int(pltpu.get_tpu_info().vmem_capacity_bytes)
    except Exception:
        return 64 << 20  # conservative fallback (v7x physical per-TC)


def _fused_norm(y2d, B, N):
    """ContextNorm (over N, unbiased var) followed by training-mode BatchNorm
    (over B*N, biased var, gamma=1 beta=0), fused analytically.

    After ContextNorm the per-channel batch mean is exactly 0, and the
    BatchNorm variance is mean_b[(N-1)/N * var/(var+eps)], so only one
    full-slab centering pass and one combined-scale multiply are needed.
    y2d: (B*N, C) f32.
    """
    C = y2d.shape[-1]
    y3 = y2d.reshape(B, N, C)
    mean = jnp.mean(y3, axis=1, keepdims=True)                 # (B,1,C)
    d = y3 - mean
    var = jnp.sum(d * d, axis=1, keepdims=True) * (1.0 / (N - 1))
    inv_ctx = jax.lax.rsqrt(var + EPS)                          # EUP slot
    bv = jnp.mean(var * ((N - 1.0) / N) * (inv_ctx * inv_ctx),
                  axis=0, keepdims=True)                        # (1,1,C)
    inv_bn = jax.lax.rsqrt(bv + EPS)
    return (d * (inv_ctx * inv_bn)).reshape(B * N, C)


def _mlp_kernel(h0_hbm, w1_ref, b1_ref, w2_ref, b2_ref, lw_ref, lb_ref,
                out_ref, h_ref, dma_sem, *, B, N, activation):
    act = _ACT[activation]
    blk = pl.program_id(0)
    nblk = pl.num_programs(0)

    # ---- block 0: pull the first-conv output (computed by XLA) into the ----
    # ---- carried VMEM activation scratch.                               ----
    @pl.when(blk == 0)
    def _init():
        cp = pltpu.make_async_copy(h0_hbm, h_ref, dma_sem)
        cp.start()
        cp.wait()

    # ---- residual block `blk` (weights streamed for this grid step) --------
    inp = h_ref[...]                                            # (M, Hp) f32
    y = jnp.dot(inp.astype(jnp.bfloat16), w1_ref[0],
                preferred_element_type=jnp.float32) + b1_ref[0]
    y = act(_fused_norm(y, B, N))
    y = jnp.dot(y.astype(jnp.bfloat16), w2_ref[0],
                preferred_element_type=jnp.float32) + b2_ref[0]
    y = act(_fused_norm(y, B, N))
    h_ref[...] = y + inp                                        # residual carry

    # ---- last_conv: hidden -> 1 as a lane reduction at the last step -------
    @pl.when(blk == nblk - 1)
    def _last():
        Hp = h_ref.shape[-1]
        h3 = h_ref[...].reshape(B, N, Hp)
        o = jnp.sum(h3 * lw_ref[...], axis=-1) + lb_ref[0, 0]
        out_ref[...] = o                                        # (B, N)


def mlp_forward(x_ncl, params, *, hidden, blocks, activation='relu'):
    """x_ncl: (B, 3, N), same convention as the PyTorch module."""
    assert blocks >= 1
    B, C, N = x_ncl.shape
    assert N >= 2, "ContextNorm uses unbiased variance over N; need N >= 2"
    # lane-aligned hidden; use 256-granularity when hidden > 128 so the
    # 256x256 MXUs on v6e/v7x see full tiles.
    Hp = _round_up(hidden, 128) if hidden <= 128 else _round_up(hidden, 256)
    f32, bf16 = jnp.float32, jnp.bfloat16
    M = B * N

    # ---- first_conv in XLA (tiny (M,3)@(3,H) matmul), padded to Hp ---------
    x = jnp.transpose(x_ncl, (0, 2, 1)).astype(f32)             # (B, N, 3)
    h0 = jnp.einsum('bnc,hc->bnh', x, params['fw'].astype(f32)) + params['fb']
    h0 = jnp.pad(h0, ((0, 0), (0, 0), (0, Hp - hidden)))
    h0 = h0.reshape(M, Hp).astype(f32)

    # ---- pack block weights once: (C_in, C_out) layout, bf16, zero-padded --
    w1 = jnp.zeros((blocks, Hp, Hp), bf16).at[:, :hidden, :hidden].set(
        jnp.transpose(params['w1'], (0, 2, 1)).astype(bf16))
    b1 = jnp.zeros((blocks, 1, Hp), f32).at[:, 0, :hidden].set(params['b1'])
    w2 = jnp.zeros((blocks, Hp, Hp), bf16).at[:, :hidden, :hidden].set(
        jnp.transpose(params['w2'], (0, 2, 1)).astype(bf16))
    b2 = jnp.zeros((blocks, 1, Hp), f32).at[:, 0, :hidden].set(params['b2'])
    lw = jnp.zeros((1, Hp), f32).at[0, :hidden].set(params['lw'][0])
    lb = params['lb'].astype(f32).reshape(1, 1)

    # ---- generation-aware VMEM budget --------------------------------------
    needed = (M * Hp * 4                       # carried h scratch (f32)
              + 2 * 2 * Hp * Hp * 2            # w1,w2 double-buffered, bf16
              + 2 * 2 * Hp * 4                 # b1,b2 double-buffered
              + Hp * 4 + M * 4)                # lw + out
    cap = _vmem_capacity_bytes()
    vmem_limit = int(min(max(2 * needed, 16 << 20), int(0.8 * cap)))

    kernel = functools.partial(_mlp_kernel, B=B, N=N, activation=activation)
    out = pl.pallas_call(
        kernel,
        out_shape=jax.ShapeDtypeStruct((B, N), f32),
        grid_spec=pltpu.PrefetchScalarGridSpec(
            num_scalar_prefetch=0,
            grid=(blocks,),
            in_specs=[
                pl.BlockSpec(memory_space=pl.ANY),                  # h0 in HBM
                pl.BlockSpec((1, Hp, Hp), lambda i: (i, 0, 0)),     # w1[i]
                pl.BlockSpec((1, 1, Hp), lambda i: (i, 0, 0)),      # b1[i]
                pl.BlockSpec((1, Hp, Hp), lambda i: (i, 0, 0)),     # w2[i]
                pl.BlockSpec((1, 1, Hp), lambda i: (i, 0, 0)),      # b2[i]
                pl.BlockSpec((1, Hp), lambda i: (0, 0)),            # lw
                pl.BlockSpec(memory_space=pltpu.MemorySpace.SMEM),  # lb scalar
            ],
            out_specs=pl.BlockSpec((B, N), lambda i: (0, 0)),       # resident out
            scratch_shapes=[
                pltpu.VMEM((M, Hp), f32),          # carried activation h
                pltpu.SemaphoreType.DMA,           # h0 -> h DMA at block 0
            ],
        ),
        compiler_params=pltpu.CompilerParams(
            dimension_semantics=("arbitrary",),    # block axis is a serial carry
            vmem_limit_bytes=vmem_limit,
        ),
    )(h0, w1, b1, w2, b2, lw, lb)
    return out


def init_params(key, hidden, blocks):
    # Conv1d weights ~ Normal(0, std=2/in_channels), biases zero (_init_weights).
    k_first, k_w1, k_w2, k_last = jax.random.split(key, 4)
    return {
        'fw': jax.random.normal(k_first, (hidden, 3), jnp.float32) * (2.0 / 3.0),
        'fb': jnp.zeros((hidden,), jnp.float32),
        'w1': jax.random.normal(k_w1, (blocks, hidden, hidden), jnp.float32) * (2.0 / hidden),
        'b1': jnp.zeros((blocks, hidden), jnp.float32),
        'w2': jax.random.normal(k_w2, (blocks, hidden, hidden), jnp.float32) * (2.0 / hidden),
        'b2': jnp.zeros((blocks, hidden), jnp.float32),
        'lw': jax.random.normal(k_last, (1, hidden), jnp.float32) * (2.0 / hidden),
        'lb': jnp.zeros((1,), jnp.float32),
    }


def _context_norm_ref(x):
    n = x.shape[1]
    mean = jnp.mean(x, axis=1, keepdims=True)
    var = jnp.sum((x - mean) ** 2, axis=1, keepdims=True) / (n - 1)
    return (x - mean) / jnp.sqrt(var + EPS)


def _batch_norm_ref(x):
    mean = jnp.mean(x, axis=(0, 1), keepdims=True)
    var = jnp.mean((x - mean) ** 2, axis=(0, 1), keepdims=True)
    return (x - mean) / jnp.sqrt(var + EPS)


def mlp_reference(x_ncl, params, *, blocks, activation='relu'):
    # Pure-JAX f32 reference (same math, no Pallas, no padding, no bf16).
    act = _ACT[activation]
    x = jnp.transpose(x_ncl, (0, 2, 1)).astype(jnp.float32)
    h = jnp.einsum('bnc,hc->bnh', x, params['fw']) + params['fb']
    for i in range(blocks):
        inp = h
        y = jnp.einsum('bnh,oh->bno', inp, params['w1'][i]) + params['b1'][i]
        y = act(_batch_norm_ref(_context_norm_ref(y)))
        y = jnp.einsum('bnh,oh->bno', y, params['w2'][i]) + params['b2'][i]
        y = act(_batch_norm_ref(_context_norm_ref(y)))
        h = y + inp
    out = jnp.einsum('bnh,oh->bno', h, params['lw']) + params['lb']
    return out[..., 0]


if __name__ == "__main__":
    hidden, blocks = 32, 2
    B, N = 2, 16   # N multiple of 8 keeps reshapes tile-aligned

    key = jax.random.PRNGKey(0)
    pkey, xkey = jax.random.split(key)
    params = init_params(pkey, hidden, blocks)
    x = jax.random.normal(xkey, (B, 3, N), dtype=jnp.float32)

    out = mlp_forward(x, params, hidden=hidden, blocks=blocks, activation='relu')
    out = jax.block_until_ready(out)

    ref = mlp_reference(x, params, blocks=blocks, activation='relu')
    assert out.shape == (B, N)
    # bf16 MXU inputs (f32 accumulation) -> loosen tolerance vs the f32 reference.
    np.testing.assert_allclose(np.asarray(out), np.asarray(ref),
                               rtol=3e-2, atol=3e-2)

    print("KERNEL_OK")
</pallas_src>

<mosaic_0001>
module attributes {stable_mosaic.version = 11 : i64} {
  func.func @_mlp_kernel(%arg0: i32, %arg1: memref<32x128xf32, #tpu.memory_space<any>>, %arg2: memref<1x128x128xbf16, #tpu.memory_space<vmem>>, %arg3: memref<1x1x128xf32, #tpu.memory_space<vmem>>, %arg4: memref<1x128x128xbf16, #tpu.memory_space<vmem>>, %arg5: memref<1x1x128xf32, #tpu.memory_space<vmem>>, %arg6: memref<1x128xf32, #tpu.memory_space<vmem>>, %arg7: memref<1x1xf32, #tpu.memory_space<smem>>, %arg8: memref<2x16xf32, #tpu.memory_space<vmem>>, %arg9: memref<32x128xf32, #tpu.memory_space<vmem>>, %arg10: memref<!tpu.dma_semaphore, #tpu.memory_space<semaphore_mem>>) attributes {dimension_semantics = [#tpu.dimension_semantics<arbitrary>], iteration_bounds = array<i64: 2>, scalar_prefetch = 0 : i64, scratch_operands = 2 : i64, tpu.core_type = #tpu.core_type<tc>, window_params = [{}, {transform_indices = @transform_1, window_bounds = array<i64: 1, 128, 128>}, {transform_indices = @transform_2, window_bounds = array<i64: 1, 1, 128>}, {transform_indices = @transform_3, window_bounds = array<i64: 1, 128, 128>}, {transform_indices = @transform_4, window_bounds = array<i64: 1, 1, 128>}, {pipeline_mode = #tpu.pipeline_mode<synchronous>, transform_indices = @transform_5, window_bounds = array<i64: 1, 128>}, {transform_indices = @transform_6, window_bounds = array<i64: 1, 1>}, {pipeline_mode = #tpu.pipeline_mode<synchronous>, transform_indices = @transform_7, window_bounds = array<i64: 2, 16>}]} {
    %c0_i32 = arith.constant 0 : i32
    %0 = arith.cmpi eq, %arg0, %c0_i32 : i32
    %1 = arith.extui %0 : i1 to i32
    %c0_i32_0 = arith.constant 0 : i32
    %2 = arith.cmpi ne, %1, %c0_i32_0 : i32
    scf.if %2 {
      tpu.enqueue_dma source(%arg1 : memref<32x128xf32, #tpu.memory_space<any>>) target(%arg9 : memref<32x128xf32, #tpu.memory_space<vmem>>) target_semaphore(%arg10 : memref<!tpu.dma_semaphore, #tpu.memory_space<semaphore_mem>>)
      tpu.wait_dma2 semaphore(%arg10 : memref<!tpu.dma_semaphore, #tpu.memory_space<semaphore_mem>>) src(%arg1 : memref<32x128xf32, #tpu.memory_space<any>>) dst(%arg9 : memref<32x128xf32, #tpu.memory_space<vmem>>)
    } else {
    }
    %c0 = arith.constant 0 : index
    %c0_1 = arith.constant 0 : index
    %3 = vector.load %arg9[%c0, %c0_1] : memref<32x128xf32, #tpu.memory_space<vmem>>, vector<32x128xf32>
    %4 = arith.truncf %3 : vector<32x128xf32> to vector<32x128xbf16>
    %c0_2 = arith.constant 0 : index
    %c0_3 = arith.constant 0 : index
    %c0_4 = arith.constant 0 : index
    %5 = vector.load %arg2[%c0_2, %c0_3, %c0_4] : memref<1x128x128xbf16, #tpu.memory_space<vmem>>, vector<1x128x128xbf16>
    %6 = vector.shape_cast %5 : vector<1x128x128xbf16> to vector<128x128xbf16>
    %cst = arith.constant dense<0.000000e+00> : vector<32x128xf32>
    %7 = tpu.matmul %4, %6, %cst {dimension_numbers = #tpu.dot_dimension_numbers<[1], [0], [0], [1], [0, 0, 1, 1], [], []>} : vector<32x128xbf16>, vector<128x128xbf16>, vector<32x128xf32> -> vector<32x128xf32>
    %c0_5 = arith.constant 0 : index
    %c0_6 = arith.constant 0 : index
    %c0_7 = arith.constant 0 : index
    %8 = vector.load %arg3[%c0_5, %c0_6, %c0_7] : memref<1x1x128xf32, #tpu.memory_space<vmem>>, vector<1x1x128xf32>
    %9 = vector.shape_cast %8 : vector<1x1x128xf32> to vector<1x128xf32>
    %10 = vector.broadcast %9 : vector<1x128xf32> to vector<32x128xf32>
    %11 = arith.addf %7, %10 : vector<32x128xf32>
    %12 = vector.shape_cast %11 : vector<32x128xf32> to vector<2x16x128xf32>
    %cst_8 = arith.constant dense<0.000000e+00> : vector<2x128xf32>
    %13 = vector.multi_reduction <add>, %12, %cst_8 [1] : vector<2x16x128xf32> to vector<2x128xf32>
    %14 = vector.shape_cast %13 : vector<2x128xf32> to vector<2x1x128xf32>
    %cst_9 = arith.constant 1.600000e+01 : f32
    %15 = vector.broadcast %cst_9 : f32 to vector<2x1x128xf32>
    %16 = arith.divf %14, %15 : vector<2x1x128xf32>
    %17 = vector.broadcast %16 : vector<2x1x128xf32> to vector<2x16x128xf32>
    %18 = arith.subf %12, %17 : vector<2x16x128xf32>
    %19 = arith.mulf %18, %18 : vector<2x16x128xf32>
    %cst_10 = arith.constant dense<0.000000e+00> : vector<2x128xf32>
    %20 = vector.multi_reduction <add>, %19, %cst_10 [1] : vector<2x16x128xf32> to vector<2x128xf32>
    %21 = vector.shape_cast %20 : vector<2x128xf32> to vector<2x1x128xf32>
    %cst_11 = arith.constant 0.0666666701 : f32
    %22 = vector.broadcast %cst_11 : f32 to vector<2x1x128xf32>
    %23 = arith.mulf %21, %22 : vector<2x1x128xf32>
    %cst_12 = arith.constant 9.99999974E-6 : f32
    %24 = vector.broadcast %cst_12 : f32 to vector<2x1x128xf32>
    %25 = arith.addf %23, %24 : vector<2x1x128xf32>
    %26 = math.rsqrt %25 : vector<2x1x128xf32>
    %cst_13 = arith.constant 9.375000e-01 : f32
    %27 = vector.broadcast %cst_13 : f32 to vector<2x1x128xf32>
    %28 = arith.mulf %23, %27 : vector<2x1x128xf32>
    %29 = arith.mulf %26, %26 : vector<2x1x128xf32>
    %30 = arith.mulf %28, %29 : vector<2x1x128xf32>
    %cst_14 = arith.constant dense<0.000000e+00> : vector<1x128xf32>
    %31 = vector.multi_reduction <add>, %30, %cst_14 [0] : vector<2x1x128xf32> to vector<1x128xf32>
    %32 = vector.shape_cast %31 : vector<1x128xf32> to vector<1x1x128xf32>
    %cst_15 = arith.constant 2.000000e+00 : f32
    %33 = vector.broadcast %cst_15 : f32 to vector<1x1x128xf32>
    %34 = arith.divf %32, %33 : vector<1x1x128xf32>
    %cst_16 = arith.constant 9.99999974E-6 : f32
    %35 = vector.broadcast %cst_16 : f32 to vector<1x1x128xf32>
    %36 = arith.addf %34, %35 : vector<1x1x128xf32>
    %37 = math.rsqrt %36 : vector<1x1x128xf32>
    %38 = vector.broadcast %37 : vector<1x1x128xf32> to vector<2x1x128xf32>
    %39 = arith.mulf %26, %38 : vector<2x1x128xf32>
    %40 = vector.broadcast %39 : vector<2x1x128xf32> to vector<2x16x128xf32>
    %41 = arith.mulf %18, %40 : vector<2x16x128xf32>
    %42 = vector.shape_cast %41 : vector<2x16x128xf32> to vector<32x128xf32>
    %cst_17 = arith.constant 0.000000e+00 : f32
    %43 = vector.broadcast %cst_17 : f32 to vector<32x128xf32>
    %44 = arith.maximumf %42, %43 : vector<32x128xf32>
    %45 = arith.truncf %44 : vector<32x128xf32> to vector<32x128xbf16>
    %c0_18 = arith.constant 0 : index
    %c0_19 = arith.constant 0 : index
    %c0_20 = arith.constant 0 : index
    %46 = vector.load %arg4[%c0_18, %c0_19, %c0_20] : memref<1x128x128xbf16, #tpu.memory_space<vmem>>, vector<1x128x128xbf16>
    %47 = vector.shape_cast %46 : vector<1x128x128xbf16> to vector<128x128xbf16>
    %cst_21 = arith.constant dense<0.000000e+00> : vector<32x128xf32>
    %48 = tpu.matmul %45, %47, %cst_21 {dimension_numbers = #tpu.dot_dimension_numbers<[1], [0], [0], [1], [0, 0, 1, 1], [], []>} : vector<32x128xbf16>, vector<128x128xbf16>, vector<32x128xf32> -> vector<32x128xf32>
    %c0_22 = arith.constant 0 : index
    %c0_23 = arith.constant 0 : index
    %c0_24 = arith.constant 0 : index
    %49 = vector.load %arg5[%c0_22, %c0_23, %c0_24] : memref<1x1x128xf32, #tpu.memory_space<vmem>>, vector<1x1x128xf32>
    %50 = vector.shape_cast %49 : vector<1x1x128xf32> to vector<1x128xf32>
    %51 = vector.broadcast %50 : vector<1x128xf32> to vector<32x128xf32>
    %52 = arith.addf %48, %51 : vector<32x128xf32>
    %53 = vector.shape_cast %52 : vector<32x128xf32> to vector<2x16x128xf32>
    %cst_25 = arith.constant dense<0.000000e+00> : vector<2x128xf32>
    %54 = vector.multi_reduction <add>, %53, %cst_25 [1] : vector<2x16x128xf32> to vector<2x128xf32>
    %55 = vector.shape_cast %54 : vector<2x128xf32> to vector<2x1x128xf32>
    %cst_26 = arith.constant 1.600000e+01 : f32
    %56 = vector.broadcast %cst_26 : f32 to vector<2x1x128xf32>
    %57 = arith.divf %55, %56 : vector<2x1x128xf32>
    %58 = vector.broadcast %57 : vector<2x1x128xf32> to vector<2x16x128xf32>
    %59 = arith.subf %53, %58 : vector<2x16x128xf32>
    %60 = arith.mulf %59, %59 : vector<2x16x128xf32>
    %cst_27 = arith.constant dense<0.000000e+00> : vector<2x128xf32>
    %61 = vector.multi_reduction <add>, %60, %cst_27 [1] : vector<2x16x128xf32> to vector<2x128xf32>
    %62 = vector.shape_cast %61 : vector<2x128xf32> to vector<2x1x128xf32>
    %cst_28 = arith.constant 0.0666666701 : f32
    %63 = vector.broadcast %cst_28 : f32 to vector<2x1x128xf32>
    %64 = arith.mulf %62, %63 : vector<2x1x128xf32>
    %cst_29 = arith.constant 9.99999974E-6 : f32
    %65 = vector.broadcast %cst_29 : f32 to vector<2x1x128xf32>
    %66 = arith.addf %64, %65 : vector<2x1x128xf32>
    %67 = math.rsqrt %66 : vector<2x1x128xf32>
    %cst_30 = arith.constant 9.375000e-01 : f32
    %68 = vector.broadcast %cst_30 : f32 to vector<2x1x128xf32>
    %69 = arith.mulf %64, %68 : vector<2x1x128xf32>
    %70 = arith.mulf %67, %67 : vector<2x1x128xf32>
    %71 = arith.mulf %69, %70 : vector<2x1x128xf32>
    %cst_31 = arith.constant dense<0.000000e+00> : vector<1x128xf32>
    %72 = vector.multi_reduction <add>, %71, %cst_31 [0] : vector<2x1x128xf32> to vector<1x128xf32>
    %73 = vector.shape_cast %72 : vector<1x128xf32> to vector<1x1x128xf32>
    %cst_32 = arith.constant 2.000000e+00 : f32
    %74 = vector.broadcast %cst_32 : f32 to vector<1x1x128xf32>
    %75 = arith.divf %73, %74 : vector<1x1x128xf32>
    %cst_33 = arith.constant 9.99999974E-6 : f32
    %76 = vector.broadcast %cst_33 : f32 to vector<1x1x128xf32>
    %77 = arith.addf %75, %76 : vector<1x1x128xf32>
    %78 = math.rsqrt %77 : vector<1x1x128xf32>
    %79 = vector.broadcast %78 : vector<1x1x128xf32> to vector<2x1x128xf32>
    %80 = arith.mulf %67, %79 : vector<2x1x128xf32>
    %81 = vector.broadcast %80 : vector<2x1x128xf32> to vector<2x16x128xf32>
    %82 = arith.mulf %59, %81 : vector<2x16x128xf32>
    %83 = vector.shape_cast %82 : vector<2x16x128xf32> to vector<32x128xf32>
    %cst_34 = arith.constant 0.000000e+00 : f32
    %84 = vector.broadcast %cst_34 : f32 to vector<32x128xf32>
    %85 = arith.maximumf %83, %84 : vector<32x128xf32>
    %86 = arith.addf %85, %3 : vector<32x128xf32>
    %c0_35 = arith.constant 0 : index
    %c0_36 = arith.constant 0 : index
    %87 = vector.load %arg9[%c0_35, %c0_36] : memref<32x128xf32, #tpu.memory_space<vmem>>, vector<32x128xf32>
    tpu.vector_store %arg9[%c0_35, %c0_36], %86 {strides = array<i32>} : memref<32x128xf32, #tpu.memory_space<vmem>>, vector<32x128xf32>,
    %c1_i32 = arith.constant 1 : i32
    %88 = arith.cmpi eq, %arg0, %c1_i32 : i32
    %89 = arith.extui %88 : i1 to i32
    %c0_i32_37 = arith.constant 0 : i32
    %90 = arith.cmpi ne, %89, %c0_i32_37 : i32
    scf.if %90 {
      %c0_38 = arith.constant 0 : index
      %c0_39 = arith.constant 0 : index
      %91 = vector.load %arg9[%c0_38, %c0_39] : memref<32x128xf32, #tpu.memory_space<vmem>>, vector<32x128xf32>
      %92 = vector.shape_cast %91 : vector<32x128xf32> to vector<2x16x128xf32>
      %c0_40 = arith.constant 0 : index
      %c0_41 = arith.constant 0 : index
      %93 = vector.load %arg6[%c0_40, %c0_41] : memref<1x128xf32, #tpu.memory_space<vmem>>, vector<1x128xf32>
      %94 = vector.shape_cast %93 : vector<1x128xf32> to vector<1x1x128xf32>
      %95 = vector.broadcast %94 : vector<1x1x128xf32> to vector<2x16x128xf32>
      %96 = arith.mulf %92, %95 : vector<2x16x128xf32>
      %cst_42 = arith.constant dense<0.000000e+00> : vector<2x16xf32>
      %97 = vector.multi_reduction <add>, %96, %cst_42 [2] : vector<2x16x128xf32> to vector<2x16xf32>
      %c0_43 = arith.constant 0 : index
      %c0_44 = arith.constant 0 : index
      %98 = memref.load %arg7[%c0_43, %c0_44] : memref<1x1xf32, #tpu.memory_space<smem>>
      %99 = vector.broadcast %98 : f32 to vector<2x16xf32>
      %100 = arith.addf %97, %99 : vector<2x16xf32>
      %c0_45 = arith.constant 0 : index
      %c0_46 = arith.constant 0 : index
      %101 = vector.load %arg8[%c0_45, %c0_46] : memref<2x16xf32, #tpu.memory_space<vmem>>, vector<2x16xf32>
      tpu.vector_store %arg8[%c0_45, %c0_46], %100 {strides = array<i32>} : memref<2x16xf32, #tpu.memory_space<vmem>>, vector<2x16xf32>,
    } else {
    }
    return
  }
  func.func @transform_1(%arg0: i32) -> (i32, i32, i32) {
    %c0_i32 = arith.constant 0 : i32
    %c0_i32_0 = arith.constant 0 : i32
    %c0_i32_1 = arith.constant 0 : i32
    return %arg0, %c0_i32, %c0_i32_0 : i32, i32, i32
  }
  func.func @transform_2(%arg0: i32) -> (i32, i32, i32) {
    %c0_i32 = arith.constant 0 : i32
    %c0_i32_0 = arith.constant 0 : i32
    %c0_i32_1 = arith.constant 0 : i32
    return %arg0, %c0_i32, %c0_i32_0 : i32, i32, i32
  }
  func.func @transform_3(%arg0: i32) -> (i32, i32, i32) {
    %c0_i32 = arith.constant 0 : i32
    %c0_i32_0 = arith.constant 0 : i32
    %c0_i32_1 = arith.constant 0 : i32
    return %arg0, %c0_i32, %c0_i32_0 : i32, i32, i32
  }
  func.func @transform_4(%arg0: i32) -> (i32, i32, i32) {
    %c0_i32 = arith.constant 0 : i32
    %c0_i32_0 = arith.constant 0 : i32
    %c0_i32_1 = arith.constant 0 : i32
    return %arg0, %c0_i32, %c0_i32_0 : i32, i32, i32
  }
  func.func @transform_5(%arg0: i32) -> (i32, i32) {
    %c0_i32 = arith.constant 0 : i32
    %c0_i32_0 = arith.constant 0 : i32
    %c0_i32_1 = arith.constant 0 : i32
    return %c0_i32, %c0_i32_0 : i32, i32
  }
  func.func @transform_6(%arg0: i32) -> (i32, i32) {
    %c0_i32 = arith.constant 0 : i32
    %c0_i32_0 = arith.constant 0 : i32
    %c0_i32_1 = arith.constant 0 : i32
    return %c0_i32, %c0_i32_0 : i32, i32
  }
  func.func @transform_7(%arg0: i32) -> (i32, i32) {
    %c0_i32 = arith.constant 0 : i32
    %c0_i32_0 = arith.constant 0 : i32
    %c0_i32_1 = arith.constant 0 : i32
    return %c0_i32, %c0_i32_0 : i32, i32
  }
}

</mosaic_0001>

<bundles_post_ra>
// kernel: tpu_custom_call.1
= control target key start
LH: loop header
LB: loop body
LE: loop exit
PB: predicated region body
PF: predicated region fallthrough
CT: control target
= control target key end

     0   :  { %s1556_s0 = inlined_call_operand.hbm [shape: f32[32,128], index: 0, kind: input, shape index: {}]   ;;  %s1557_s1 = inlined_call_operand.hbm [shape: bf16[2,128,128], index: 1, kind: input, shape index: {}]   ;;  %s1558_s2 = inlined_call_operand.vmem [shape: f32[2,1,128], index: 2, kind: input, shape index: {}]   ;;  %s1559_s3 = inlined_call_operand.hbm [shape: bf16[2,128,128], index: 3, kind: input, shape index: {}]   ;;  %s1560_s4 = inlined_call_operand.vmem [shape: f32[2,1,128], index: 4, kind: input, shape index: {}]   ;;  %s1561_s5 = inlined_call_operand.vmem [shape: f32[1,128], index: 5, kind: input, shape index: {}]   ;;  %s1562_s6 = inlined_call_operand.<no memory space> [shape: f32[1,1], index: 6, kind: input, shape index: {}]   ;;  %s1563_s7 = inlined_call_operand.hbm [shape: f32[2,16], index: 7, kind: output, shape index: {}]  }
   0x1   :  { %1564 = sst [smem:[#allocation19_spill]] %s1557_s1 }
   0x2   :  { %12 = sst [smem:[#allocation4]] %s1562_s6 }
   0x3   :  { %13 = vsyncpa [#allocation6], 0 }
   0x4   :  { %15 = vsyncpa [#allocation6 + $0x1], 0 }
   0x5   :  { %16 = vsyncpa [#allocation9], 0 }
   0x6   :  { %18 = vsyncpa [#allocation9 + $0x1], 0 }
   0x7   :  { %19 = vsyncpa [#allocation7], 0  ;;  %s1302_s26 = smov 0   ;;  %s1304_s27 = smov 0  }
   0x8   :  { %s1306_s28 = smov 0   ;;  %s1308_s29 = smov 0  }
   0x9 LB: > { %s1321_s6 = sadd.s32 4294967295, %s1251_s29   ;;  %s1324_s30 = sadd.s32 1, %s1251_s29   ;;  %s1251_s29 = sphi %s1308_s29, %s1573_s29   ;;  %s1247_s28 = sphi %s1306_s28, %s1572_s28   ;;  %s1243_s27 = sphi %s1304_s27, %s1571_s27   ;;  %s1239_s26 = sphi %s1302_s26, %s1570_s26  }
   0xa   : > { %s29_s8 = ssub.s32 %s1251_s29, %s1324_s30  ;;  %s32_s9 = sadd.s32 1, %s1247_s28 }
   0xb   : > { %p30_p0 = scmp.eq.s32.totalorder %s29_s8, 0  ;;  %p39_p1 = scmp.ne.s32.totalorder %s1247_s28, %s1243_s27 }
   0xc   : > { %p40_p2 = scmp.eq.s32.totalorder %s1251_s29, 0  ;;  %p45_p3 = scmp.ne.s32.totalorder %s1243_s27, %s1239_s26 }
   0xd   : > { %s1334_s10 = scalar_select %p30_p0, %s1247_s28, %s32_s9  }
   0xe   : > { %p1336_p4 = por %p40_p2, %p39_p1  ;;  %p46_p5 = scmp.eq.s32.totalorder %s1321_s6, 0 }
   0xf   : > { %p1028_p6 = scmp.lt.s32.totalorder %s1251_s29, 2  ;;  %s1349_s13 = sand.u32 1, %s1247_s28  }
  0x10   : > { %p1344_p7 = por %p46_p5, %p45_p3  ;;  %s896_s14 = sshll.u32 %s1349_s13, 6 }
  0x11   : > { %s976_s15 = sshll.u32 %s1251_s29, 6  ;;  %s1567_s1 = sld [smem:[#allocation19_spill]] }
  0x12   : > { %s220_s19 = scalar_lea.vmem [#allocation5], %s896_s14  ;;  %p1362_p8 = pnand %p1028_p6, %p1336_p4 }
  0x13   : > { %s228_s20 = sshll.u32 %s220_s19, 4  ;;  %p902_p9 = scmp.ge.s32.totalorder %s1251_s29, 1  ;;  %s229_s20 = int_to_ptr.vmem [resolvable:$true] %s228_s20 }
  0x14   : > { %s217_s23 = scalar_lea.sflag [#allocation6], %s1349_s13  ;;  %p1093_p11 = pneg %p1362_p8 }
  0x17   : > { %s225_s18 = scalar_lea.hbm %s1567_s1, %s976_s15  ;;  %s1096_s9 = scalar_lea.hbm %s1567_s1, 128 }
  0x18   : > { %s226_s21 = sshll.u32 %s225_s18, 4  ;;  %s227_s21 = int_to_ptr.hbm [resolvable:$true] %s226_s21 }
  0x19   : > { %s1089_s24 = sshra.s32 %s227_s21, 4  ;;  %s1090_s24 = int_to_ptr.hbm [resolvable:$true] %s1089_s24 }
  0x1a   : > { %s1091_s25 = scalar_lea.hbm %s1090_s24, 64  ;;  %p1097_p0 = scmp.lt.s32.totalorder %s1090_s24, %s1567_s1 }
  0x1b   : > { %p1092_p10 = scmp.ne.s32.totalorder %s1090_s24, %s1091_s25  ;;  %p1098_p1 = scmp.lt.s32.totalorder %s1096_s9, %s1091_s25 }
  0x1d   : > { %p1094_p12 = pnand %p1093_p11, %p1092_p10  ;;  %p1099_p2 = por %p1098_p1, %p1097_p0 }
  0x1f   : > { %p1095_p13 = pneg %p1094_p12 }
  0x21   : > { %p1100_p3 = pnand %p1099_p2, %p1095_p13 }
  0x23   : > { %1103 = shalt.err (!%p1100_p3)
}
  0x24   : > { %s1253_s17 = smov 64   ;;  %s1254_s18 = smov 4  }
  0x25   : > { %1024 = dma.hbm_to_vmem [thread:$0]  (!%p1362_p8), %s227_s21, 1024, %s229_s20, %s217_s23, %s1253_s17, %s1253_s17, %s1254_s18  }
  0x26   : > { %p270_p4 = scmp.lt.s32.totalorder %s1251_s29, 3  ;;  %s253_s24 = scalar_lea.hbm %s1559_s3, %s976_s15 }
  0x27   : > { %s254_s8 = sshll.u32 %s253_s24, 4  ;;  %s248_s9 = scalar_lea.vmem [#allocation8], %s896_s14  ;;  %s255_s8 = int_to_ptr.hbm [resolvable:$true] %s254_s8 }
  0x28   : > { %p1389_p6 = pnand %p902_p9, %p270_p4  ;;  %s256_s11 = sshll.u32 %s248_s9, 4  ;;  %s257_s11 = int_to_ptr.vmem [resolvable:$true] %s256_s11 }
  0x29   : > { %s245_s16 = scalar_lea.sflag [#allocation9], %s1349_s13  ;;  %s1119_s1 = sshra.s32 %s255_s8, 4  ;;  %s1120_s1 = int_to_ptr.hbm [resolvable:$true] %s1119_s1 }
  0x2a   : > { %s1121_s20 = scalar_lea.hbm %s1120_s1, 64  ;;  %s1126_s21 = scalar_lea.hbm %s1559_s3, 128 }
  0x2b   : > { %p1122_p10 = scmp.ne.s32.totalorder %s1120_s1, %s1121_s20  ;;  %p1127_p9 = scmp.lt.s32.totalorder %s1120_s1, %s1559_s3 }
  0x2c   : > { %p1128_p0 = scmp.lt.s32.totalorder %s1126_s21, %s1121_s20 }
  0x2d   : > { %p1124_p12 = pnand %p1122_p10, %p1093_p11 }
  0x2e   : > { %p1129_p1 = por %p1128_p0, %p1127_p9 }
  0x2f   : > { %p1125_p13 = pneg %p1124_p12 }
  0x31   : > { %p1130_p2 = pnand %p1129_p1, %p1125_p13 }
  0x33   : > { %1133 = shalt.err (!%p1130_p2)
}
  0x34   : > { %1027 = dma.hbm_to_vmem [thread:$0]  (!%p1362_p8), %s255_s8, 1024, %s257_s11, %s245_s16, %s1253_s17, %s1253_s17, %s1254_s18  }
  0x35   : > { %274 = sbr.rel (%p1389_p6) target bundleno = 716 (0x2cc), region = 44  ;;  %s276_s13 = sand.u32 (!%p1389_p6), 1, %s1243_s27  }
  0x36   : > { %s903_s14 = sshll.u32 (!%p1389_p6), %s276_s13, 6  ;;  %s277_s26 = scalar_lea.sflag (!%p1389_p6), [#allocation6], %s276_s13 }
  0x37   : > { %s1410_s24 = scalar_lea.vmem (!%p1389_p6), [#allocation5], %s903_s14 }
  0x3a   : > { %1222 = dma.done.wait (%p1344_p7), %s277_s26, 1024  }
  0x3b   : > { %1224 = vsyncadd (%p1344_p7), %s277_s26, 4294966272  ;;  %s287_s1 = scalar_lea.sflag [#allocation9], %s276_s13  ;;  %s1416_s9 = scalar_lea.vmem [#allocation8], %s903_s14 }
  0x3c   : > { %1226 = dma.done.wait (%p1344_p7), %s287_s1, 1024  }
  0x3d   : > { %1228 = vsyncadd (%p1344_p7), %s287_s1, 4294966272  ;;  %p326_p8 = scmp.lt.s32.totalorder %s1321_s6, 1  ;;  %s343_s18 = sshll.u32 %s1556_s0, 4  ;;  %s344_s18 = int_to_ptr.hbm [resolvable:$true] %s343_s18 }
  0x3e   : > { %s1255_s8 = smov [#allocation2]  }
  0x3f   : > { %s1427_s25 = scalar_select %p326_p8, %s1321_s6, 1 }
  0x40   : > { %s345_s11 = sshll.u32 %s1255_s8, 4  ;;  %s346_s11 = int_to_ptr.vmem [resolvable:$true] %s345_s11 }
  0x41   : > { %s328_s12 = scalar_lea.vmem %s1558_s2, %s1427_s25  ;;  %s331_s21 = scalar_lea.vmem %s1560_s4, %s1427_s25 }
  0x42   : > { %1015 = dma.hbm_to_vmem [thread:$0]  (%p46_p5), %s344_s18, 512, %s346_s11, [#allocation3] }
  0x43   : > { %1230 = dma.done.wait (%p46_p5), [#allocation3], 512 }
  0x44   : > { %1232 = vsyncadd (%p46_p5), [#allocation3], 4294966784  ;;  %v985_v0 = vld [vmem:[%s1410_s24 + $0x38] sm:$0xff]  ;;  %v984_v1 = vld [vmem:[%s1410_s24 + $0x30] sm:$0xff]  ;;  %v1256_v14 = vmov 16.0   ;;  %p970_p5 = scmp.ne.s32.totalorder %s1321_s6, 1 }
  0x45   : > { %426 = vmatpush.bf16.msra.mxu0 %v985_v0  ;;  %994 = vmatpush.bf16.msra.mxu2 %v985_v0  ;;  %v983_v2 = vld [vmem:[%s1410_s24 + $0x28] sm:$0xff]  ;;  %v982_v3 = vld [vmem:[%s1410_s24 + $0x20] sm:$0xff]  ;;  %v981_v4 = vld [vmem:[%s1410_s24 + $0x18] sm:$0xff]  ;;  %1072 = vrcp.f32 %v1256_v14  ;;  %s762_s1 = sld [smem:[#allocation4]] (!%p970_p5) }
  0x46   : > { %v980_v5 = vld [vmem:[%s1410_s24 + $0x10] sm:$0xff]  ;;  %v979_v6 = vld [vmem:[%s1410_s24 + $0x8] sm:$0xff]  ;;  %v978_v7 = vld [vmem:[%s1410_s24] sm:$0xff] }
  0x47   : > { %v1451_v8 = vld [vmem:[#allocation2] sm:$0xff]  ;;  %v1453_v9 = vld [vmem:[#allocation2 + $0x8] sm:$0xff]  ;;  %v1455_v10 = vld [vmem:[#allocation2 + $0x10] sm:$0xff] }
  0x48   : > { %v1457_v11 = vld [vmem:[#allocation2 + $0x18] sm:$0xff]  ;;  %v356_v12 = vpack.c.bf16 %v1453_v9, %v1451_v8  ;;  %v1070_v17 = vld [vmem:[%s328_s12] ss:$0 sm:$0xff]  ;;  %v992_v60 = vld [vmem:[%s1416_s9 + $0x30] sm:$0xff] }
  0x49   : > { %427 = vmatpush.bf16.msra.mxu0 %v984_v1  ;;  %995 = vmatpush.bf16.msra.mxu2 %v984_v1  ;;  %v357_v13 = vpack.c.bf16 %v1457_v11, %v1455_v10  ;;  %v993_v57 = vld [vmem:[%s1416_s9 + $0x38] sm:$0xff]  ;;  %v991_v1 = vld [vmem:[%s1416_s9 + $0x28] sm:$0xff] }
  0x4a   : > { %620 = vmatpush.bf16.msra.mxu1 %v993_v57  ;;  %1002 = vmatpush.bf16.msra.mxu3 %v993_v57  ;;  %v989_v14 = vld [vmem:[%s1416_s9 + $0x18] sm:$0xff] }
  0x4b   : > { %v1073_v16 = vpop.eup %1072 }
  0x4c   : > { %v460_v19 = vmul.f32 16.0, %v1073_v16  ;;  %vm464_vm0 = vweird.f32 %v1073_v16 }
  0x4d   : > { %428 = vmatpush.bf16.msra.mxu0 %v983_v2  ;;  %996 = vmatpush.bf16.msra.mxu2 %v983_v2 }
  0x4e   : > { %v461_v23 = vsub.f32 1.0, %v460_v19  ;;  %621 = vmatpush.bf16.msra.mxu1 %v992_v60  ;;  %1003 = vmatpush.bf16.msra.mxu3 %v992_v60 }
  0x50   : > { %v462_v26 = vmul.f32 %v1073_v16, %v461_v23 }
  0x51   : > { %429 = vmatpush.bf16.msra.mxu0 %v982_v3  ;;  %997 = vmatpush.bf16.msra.mxu2 %v982_v3 }
  0x52   : > { %v463_v33 = vadd.f32 %v1073_v16, %v462_v26  ;;  %622 = vmatpush.bf16.msra.mxu1 %v991_v1  ;;  %1004 = vmatpush.bf16.msra.mxu3 %v991_v1 }
  0x54   : > { %v1468_v38 = vsel %vm464_vm0, %v1073_v16, %v463_v33  ;;  %v1257_v16 = vmov 2.0  }
  0x55   : > { %430 = vmatpush.bf16.msra.mxu0 %v981_v4  ;;  %998 = vmatpush.bf16.msra.mxu2 %v981_v4 }
  0x59   : > { %431 = vmatpush.bf16.msra.mxu0 %v980_v5  ;;  %999 = vmatpush.bf16.msra.mxu2 %v980_v5 }
  0x5d   : > { %432 = vmatpush.bf16.msra.mxu0 %v979_v6  ;;  %1000 = vmatpush.bf16.msra.mxu2 %v979_v6  ;;  %v990_v6 = vld [vmem:[%s1416_s9 + $0x20] sm:$0xff] }
  0x5e   : > { %623 = vmatpush.bf16.msra.mxu1 %v990_v6  ;;  %1005 = vmatpush.bf16.msra.mxu3 %v990_v6 }
  0x61   : > { %433 = vmatpush.bf16.msra.mxu0 %v978_v7  ;;  %1001 = vmatpush.bf16.msra.mxu2 %v978_v7 }
  0x62   : > { %624 = vmatpush.bf16.msra.mxu1 %v989_v14  ;;  %1006 = vmatpush.bf16.msra.mxu3 %v989_v14 }
  0x64   : > { %434 = vmatmul.bf16.vlgmr.msra.gmra.mxu0 %v356_v12  ;;  %439 = vmatmul.bf16.vlgmr.msra.gmra.mxu2 %v357_v13 }
  0xe1   : > { %v435_v15 = vpop.f32.mrf.mxu0 }
  0xe2   : > { %v436_v21 = vadd.f32 %v1070_v17, %v435_v15 }
  0xe7   : > { %v440_v18 = vpop.f32.mrf.mxu2 }
  0xe8   : > { %v441_v28 = vadd.f32 %v1070_v17, %v440_v18  ;;  %v988_v18 = vld [vmem:[%s1416_s9 + $0x10] sm:$0xff] }
  0xe9   : > { %v437_v20 = vpop.f32.mrf.mxu0  ;;  %625 = vmatpush.bf16.msra.mxu1 %v988_v18  ;;  %1007 = vmatpush.bf16.msra.mxu3 %v988_v18 }
  0xea   : > { %v438_v22 = vadd.f32 %v1070_v17, %v437_v20 }
  0xec   : > { %v445_v24 = vadd.f32 %v438_v22, %v436_v21 }
  0xee   : > { %v446_v25 = vrot.slane %v445_v24, 4 }
  0xef   : > { %v442_v27 = vpop.f32.mrf.mxu2 }
  0xf0   : > { %v447_v29 = vadd.f32 %v446_v25, %v445_v24  ;;  %v443_v30 = vadd.f32 %v1070_v17, %v442_v27 }
  0xf2   : > { %v448_v31 = vrot.slane %v447_v29, 2  ;;  %v452_v32 = vadd.f32 %v443_v30, %v441_v28 }
  0xf4   : > { %v449_v34 = vadd.f32 %v448_v31, %v447_v29  ;;  %v453_v35 = vrot.slane %v452_v32, 4 }
  0xf6   : > { %v450_v36 = vrot.slane %v449_v34, 1  ;;  %v454_v37 = vadd.f32 %v453_v35, %v452_v32 }
  0xf8   : > { %v451_v39 = vadd.f32 %v450_v36, %v449_v34  ;;  %v455_v40 = vrot.slane %v454_v37, 2 }
  0xfa   : > { %v466_v41 = vmul.f32 %v1468_v38, %v451_v39  ;;  %v456_v42 = vadd.f32 %v455_v40, %v454_v37 }
  0xfc   : > { %v1471_v43 = vsub.f32 %v438_v22, %v466_v41  ;;  %v457_v44 = vrot.slane %v456_v42, 1  ;;  %v1473_v45 = vsub.f32 %v436_v21, %v466_v41  ;;  %v987_v22 = vld [vmem:[%s1416_s9 + $0x8] sm:$0xff] }
  0xfd   : > { %626 = vmatpush.bf16.msra.mxu1 %v987_v22  ;;  %1008 = vmatpush.bf16.msra.mxu3 %v987_v22 }
  0xfe   : > { %v473_v46 = vmul.f32 %v1471_v43, %v1471_v43  ;;  %v458_v47 = vadd.f32 %v457_v44, %v456_v42  ;;  %v472_v48 = vmul.f32 %v1473_v45, %v1473_v45 }
 0x100   : > { %v467_v49 = vmul.f32 %v1468_v38, %v458_v47  ;;  %v476_v50 = vadd.f32 %v473_v46, %v472_v48 }
 0x102   : > { %v1480_v51 = vsub.f32 %v441_v28, %v467_v49  ;;  %v1482_v52 = vsub.f32 %v443_v30, %v467_v49  ;;  %v477_v53 = vrot.slane %v476_v50, 4  ;;  %v986_v28 = vld [vmem:[%s1416_s9] sm:$0xff] }
 0x103   : > { %627 = vmatpush.bf16.msra.mxu1 %v986_v28  ;;  %1009 = vmatpush.bf16.msra.mxu3 %v986_v28 }
 0x104   : > { %v474_v54 = vmul.f32 %v1480_v51, %v1480_v51  ;;  %v475_v55 = vmul.f32 %v1482_v52, %v1482_v52  ;;  %v478_v56 = vadd.f32 %v477_v53, %v476_v50 }
 0x106   : > { %v483_v58 = vadd.f32 %v475_v55, %v474_v54  ;;  %v479_v59 = vrot.slane %v478_v56, 2 }
 0x108   : > { %v484_v61 = vrot.slane %v483_v58, 4  ;;  %v480_v62 = vadd.f32 %v479_v59, %v478_v56 }
 0x10a   : > { %v485_v63 = vadd.f32 %v484_v61, %v483_v58  ;;  %v481_v0 = vrot.slane %v480_v62, 1 }
 0x10c   : > { %v486_v2 = vrot.slane %v485_v63, 2  ;;  %v482_v3 = vadd.f32 %v481_v0, %v480_v62 }
 0x10e   : > { %v487_v4 = vadd.f32 %v486_v2, %v485_v63  ;;  %v490_v5 = vmul.f32 0.06666667, %v482_v3 }
 0x110   : > { %v488_v7 = vrot.slane %v487_v4, 1  ;;  %v492_v12 = vadd.f32 1e-05, %v490_v5  ;;  %v514_v44 = vmul.f32 0.9375, %v490_v5 }
 0x112   : > { %v489_v13 = vadd.f32 %v488_v7, %v487_v4  ;;  %1074 = vrsqrt.f32 %v492_v12  ;;  %vm500_vm2 = vweird.f32 %v492_v12 }
 0x113   : > { %1076 = vrcp.f32 %v1257_v16 }
 0x114   : > { %v491_v15 = vmul.f32 0.06666667, %v489_v13 }
 0x116   : > { %v493_v17 = vadd.f32 1e-05, %v491_v15  ;;  %v515_v42 = vmul.f32 0.9375, %v491_v15 }
 0x118   : > { %v1075_v19 = vpop.eup %1074  ;;  %1078 = vrsqrt.f32 %v493_v17  ;;  %vm510_vm5 = vweird.f32 %v493_v17 }
 0x119   : > { %v495_v20 = vmul.f32 %v1075_v19, %v492_v12  ;;  %v1077_v21 = vpop.eup %1076  ;;  %vm501_vm1 = vweird.f32 %v1075_v19 }
 0x11a   : > { %v522_v25 = vmul.f32 2.0, %v1077_v21  ;;  %vm502_vm3 = vmor %vm500_vm2, %vm501_vm1  ;;  %vm526_vm7 = vweird.f32 %v1077_v21 }
 0x11b   : > { %v496_v23 = vmul.f32 %v1075_v19, %v495_v20 }
 0x11c   : > { %v523_v32 = vsub.f32 1.0, %v522_v25 }
 0x11d   : > { %v497_v24 = vmul.f32 0.5, %v496_v23 }
 0x11e   : > { %v1079_v26 = vpop.eup %1078  ;;  %v524_v36 = vmul.f32 %v1077_v21, %v523_v32 }
 0x11f   : > { %v505_v27 = vmul.f32 %v1079_v26, %v493_v17  ;;  %v498_v29 = vsub.f32 1.5, %v497_v24  ;;  %vm511_vm4 = vweird.f32 %v1079_v26 }
 0x120   : > { %vm512_vm6 = vmor %vm510_vm5, %vm511_vm4  ;;  %v525_v41 = vadd.f32 %v1077_v21, %v524_v36 }
 0x121   : > { %v506_v30 = vmul.f32 %v1079_v26, %v505_v27  ;;  %v499_v31 = vmul.f32 %v1075_v19, %v498_v29 }
 0x122   : > { %v1496_v49 = vsel %vm526_vm7, %v1077_v21, %v525_v41 }
 0x123   : > { %v507_v33 = vmul.f32 0.5, %v506_v30  ;;  %v503_v35 = vsel %vm502_vm3, %v1075_v19, %v499_v31 }
 0x124   : > { %v516_v39 = vmul.f32 %v503_v35, %v503_v35 }
 0x125   : > { %v508_v34 = vsub.f32 1.5, %v507_v33 }
 0x126   : > { %v518_v47 = vmul.f32 %v516_v39, %v514_v44 }
 0x127   : > { %v509_v37 = vmul.f32 %v1079_v26, %v508_v34 }
 0x129   : > { %v513_v40 = vsel %vm512_vm6, %v1079_v26, %v509_v37 }
 0x12a   : > { %v517_v46 = vmul.f32 %v513_v40, %v513_v40 }
 0x12c   : > { %v519_v48 = vmul.f32 %v517_v46, %v515_v42 }
 0x12e   : > { %v520_v50 = vadd.f32 %v519_v48, %v518_v47 }
 0x130   : > { %v528_v53 = vmul.f32 %v1496_v49, %v520_v50 }
 0x132   : > { %v529_v54 = vadd.f32 1e-05, %v528_v53 }
 0x134   : > { %1080 = vrsqrt.f32 %v529_v54  ;;  %vm536_vm9 = vweird.f32 %v529_v54 }
 0x13a   : > { %v1081_v55 = vpop.eup %1080 }
 0x13b   : > { %v531_v56 = vmul.f32 %v1081_v55, %v529_v54  ;;  %vm537_vm8 = vweird.f32 %v1081_v55 }
 0x13c   : > { %vm538_vm10 = vmor %vm536_vm9, %vm537_vm8 }
 0x13d   : > { %v532_v57 = vmul.f32 %v1081_v55, %v531_v56 }
 0x13f   : > { %v533_v58 = vmul.f32 0.5, %v532_v57 }
 0x141   : > { %v534_v59 = vsub.f32 1.5, %v533_v58 }
 0x143   : > { %v535_v60 = vmul.f32 %v1081_v55, %v534_v59 }
 0x145   : > { %v539_v61 = vsel %vm538_vm10, %v1081_v55, %v535_v60 }
 0x146   : > { %v540_v62 = vmul.f32 %v539_v61, %v503_v35  ;;  %v541_v63 = vmul.f32 %v539_v61, %v513_v40 }
 0x148   : > { %v542_v0 = vmul.f32 %v540_v62, %v1473_v45  ;;  %v543_v1 = vmul.f32 %v540_v62, %v1471_v43  ;;  %v544_v2 = vmul.f32 %v541_v63, %v1480_v51  ;;  %v545_v3 = vmul.f32 %v541_v63, %v1482_v52  ;;  %v1071_v45 = vld [vmem:[%s331_s21] ss:$0 sm:$0xff] }
 0x14a   : > { %v546_v4 = vmax.f32 %v542_v0, 0.0  ;;  %v547_v5 = vmax.f32 %v543_v1, 0.0  ;;  %v548_v6 = vmax.f32 %v544_v2, 0.0  ;;  %v549_v7 = vmax.f32 %v545_v3, 0.0 }
 0x14c   : > { %v550_v12 = vpack.c.bf16 %v547_v5, %v546_v4  ;;  %v551_v13 = vpack.c.bf16 %v549_v7, %v548_v6 }
 0x14e   : > { %628 = vmatmul.bf16.vlgmr.msra.gmra.mxu1 %v550_v12  ;;  %633 = vmatmul.bf16.vlgmr.msra.gmra.mxu3 %v551_v13 }
 0x1cb   : > { %v629_v14 = vpop.f32.mrf.mxu1 }
 0x1cc   : > { %v630_v16 = vadd.f32 %v1071_v45, %v629_v14 }
 0x1d1   : > { %v634_v15 = vpop.f32.mrf.mxu3 }
 0x1d2   : > { %v635_v19 = vadd.f32 %v1071_v45, %v634_v15 }
 0x1d3   : > { %v631_v43 = vpop.f32.mrf.mxu1 }
 0x1d4   : > { %v632_v51 = vadd.f32 %v1071_v45, %v631_v43 }
 0x1d6   : > { %v639_v17 = vadd.f32 %v632_v51, %v630_v16 }
 0x1d8   : > { %v640_v52 = vrot.slane %v639_v17, 4 }
 0x1d9   : > { %v636_v18 = vpop.f32.mrf.mxu3 }
 0x1da   : > { %v641_v20 = vadd.f32 %v640_v52, %v639_v17  ;;  %v637_v21 = vadd.f32 %v1071_v45, %v636_v18 }
 0x1dc   : > { %v642_v22 = vrot.slane %v641_v20, 2  ;;  %v646_v23 = vadd.f32 %v637_v21, %v635_v19 }
 0x1de   : > { %v643_v24 = vadd.f32 %v642_v22, %v641_v20  ;;  %v647_v25 = vrot.slane %v646_v23, 4 }
 0x1e0   : > { %v644_v26 = vrot.slane %v643_v24, 1  ;;  %v648_v27 = vadd.f32 %v647_v25, %v646_v23 }
 0x1e2   : > { %v645_v28 = vadd.f32 %v644_v26, %v643_v24  ;;  %v649_v29 = vrot.slane %v648_v27, 2 }
 0x1e4   : > { %v653_v30 = vmul.f32 %v645_v28, %v1468_v38  ;;  %v650_v31 = vadd.f32 %v649_v29, %v648_v27 }
 0x1e6   : > { %v1509_v32 = vsub.f32 %v630_v16, %v653_v30  ;;  %v1511_v33 = vsub.f32 %v632_v51, %v653_v30  ;;  %v651_v34 = vrot.slane %v650_v31, 1 }
 0x1e8   : > { %v659_v35 = vmul.f32 %v1509_v32, %v1509_v32  ;;  %v660_v36 = vmul.f32 %v1511_v33, %v1511_v33  ;;  %v652_v37 = vadd.f32 %v651_v34, %v650_v31 }
 0x1ea   : > { %v663_v39 = vadd.f32 %v660_v36, %v659_v35  ;;  %v654_v40 = vmul.f32 %v652_v37, %v1468_v38 }
 0x1ec   : > { %v664_v41 = vrot.slane %v663_v39, 4  ;;  %v1518_v42 = vsub.f32 %v635_v19, %v654_v40  ;;  %v1520_v44 = vsub.f32 %v637_v21, %v654_v40 }
 0x1ee   : > { %v665_v46 = vadd.f32 %v664_v41, %v663_v39  ;;  %v661_v47 = vmul.f32 %v1518_v42, %v1518_v42  ;;  %v662_v48 = vmul.f32 %v1520_v44, %v1520_v44 }
 0x1f0   : > { %v666_v50 = vrot.slane %v665_v46, 2  ;;  %v670_v53 = vadd.f32 %v662_v48, %v661_v47 }
 0x1f2   : > { %v667_v54 = vadd.f32 %v666_v50, %v665_v46  ;;  %v671_v55 = vrot.slane %v670_v53, 4 }
 0x1f4   : > { %v668_v56 = vrot.slane %v667_v54, 1  ;;  %v672_v57 = vadd.f32 %v671_v55, %v670_v53 }
 0x1f6   : > { %v669_v58 = vadd.f32 %v668_v56, %v667_v54  ;;  %v673_v38 = vrot.slane %v672_v57, 2 }
 0x1f8   : > { %v677_v59 = vmul.f32 0.06666667, %v669_v58  ;;  %v674_v60 = vadd.f32 %v673_v38, %v672_v57 }
 0x1fa   : > { %v679_v61 = vadd.f32 1e-05, %v677_v59  ;;  %v675_v62 = vrot.slane %v674_v60, 1  ;;  %v701_v52 = vmul.f32 0.9375, %v677_v59 }
 0x1fc   : > { %1082 = vrsqrt.f32 %v679_v61  ;;  %v676_v63 = vadd.f32 %v675_v62, %v674_v60  ;;  %vm687_vm12 = vweird.f32 %v679_v61 }
 0x1fe   : > { %v678_v0 = vmul.f32 0.06666667, %v676_v63 }
 0x200   : > { %v680_v1 = vadd.f32 1e-05, %v678_v0  ;;  %v702_v18 = vmul.f32 0.9375, %v678_v0 }
 0x202   : > { %v1083_v2 = vpop.eup %1082  ;;  %1084 = vrsqrt.f32 %v680_v1  ;;  %vm697_vm15 = vweird.f32 %v680_v1 }
 0x203   : > { %v682_v3 = vmul.f32 %v1083_v2, %v679_v61  ;;  %vm688_vm11 = vweird.f32 %v1083_v2 }
 0x204   : > { %vm689_vm13 = vmor %vm687_vm12, %vm688_vm11 }
 0x205   : > { %v683_v4 = vmul.f32 %v1083_v2, %v682_v3 }
 0x207   : > { %v684_v5 = vmul.f32 0.5, %v683_v4 }
 0x208   : > { %v1085_v6 = vpop.eup %1084 }
 0x209   : > { %v685_v7 = vsub.f32 1.5, %v684_v5  ;;  %v692_v12 = vmul.f32 %v1085_v6, %v680_v1  ;;  %vm698_vm14 = vweird.f32 %v1085_v6 }
 0x20a   : > { %vm699_vm0 = vmor %vm697_vm15, %vm698_vm14 }
 0x20b   : > { %v686_v13 = vmul.f32 %v1083_v2, %v685_v7  ;;  %v693_v14 = vmul.f32 %v1085_v6, %v692_v12 }
 0x20d   : > { %v694_v45 = vmul.f32 0.5, %v693_v14  ;;  %v690_v15 = vsel %vm689_vm13, %v1083_v2, %v686_v13 }
 0x20e   : > { %v703_v51 = vmul.f32 %v690_v15, %v690_v15 }
 0x20f   : > { %v695_v43 = vsub.f32 1.5, %v694_v45 }
 0x210   : > { %v705_v20 = vmul.f32 %v703_v51, %v701_v52 }
 0x211   : > { %v696_v16 = vmul.f32 %v1085_v6, %v695_v43 }
 0x213   : > { %v700_v17 = vsel %vm699_vm0, %v1085_v6, %v696_v16 }
 0x214   : > { %v704_v19 = vmul.f32 %v700_v17, %v700_v17 }
 0x216   : > { %v706_v21 = vmul.f32 %v704_v19, %v702_v18 }
 0x218   : > { %v707_v22 = vadd.f32 %v706_v21, %v705_v20 }
 0x21a   : > { %v708_v23 = vmul.f32 %v707_v22, %v1496_v49 }
 0x21c   : > { %v709_v24 = vadd.f32 1e-05, %v708_v23 }
 0x21e   : > { %1086 = vrsqrt.f32 %v709_v24  ;;  %vm716_vm2 = vweird.f32 %v709_v24 }
 0x224   : > { %v1087_v25 = vpop.eup %1086 }
 0x225   : > { %v711_v26 = vmul.f32 %v1087_v25, %v709_v24  ;;  %vm717_vm1 = vweird.f32 %v1087_v25 }
 0x226   : > { %vm718_vm3 = vmor %vm716_vm2, %vm717_vm1 }
 0x227   : > { %v712_v27 = vmul.f32 %v1087_v25, %v711_v26 }
 0x229   : > { %v713_v28 = vmul.f32 0.5, %v712_v27 }
 0x22b   : > { %v714_v29 = vsub.f32 1.5, %v713_v28 }
 0x22d   : > { %v715_v30 = vmul.f32 %v1087_v25, %v714_v29 }
 0x22f   : > { %v719_v31 = vsel %vm718_vm3, %v1087_v25, %v715_v30 }
 0x230   : > { %v720_v34 = vmul.f32 %v719_v31, %v690_v15  ;;  %v721_v35 = vmul.f32 %v719_v31, %v700_v17 }
 0x232   : > { %v722_v36 = vmul.f32 %v720_v34, %v1509_v32  ;;  %v723_v37 = vmul.f32 %v720_v34, %v1511_v33  ;;  %v724_v49 = vmul.f32 %v721_v35, %v1518_v42  ;;  %v725_v39 = vmul.f32 %v721_v35, %v1520_v44 }
 0x234   : > { %v726_v40 = vmax.f32 %v722_v36, 0.0  ;;  %v727_v41 = vmax.f32 %v723_v37, 0.0  ;;  %v728_v46 = vmax.f32 %v724_v49, 0.0  ;;  %v729_v47 = vmax.f32 %v725_v39, 0.0 }
 0x236   : > { %v730_v48 = vadd.f32 %v726_v40, %v1451_v8  ;;  %v731_v50 = vadd.f32 %v727_v41, %v1453_v9  ;;  %v732_v53 = vadd.f32 %v728_v46, %v1455_v10  ;;  %v733_v54 = vadd.f32 %v729_v47, %v1457_v11 }
 0x237   : > { %741 = sbr.rel (%p970_p5) target bundleno = 711 (0x2c7), region = 64 }
 0x238   : > { %734 = vst [vmem:[#allocation2] sm:$0xff] %v730_v48 }
 0x239   : > { %735 = vst [vmem:[#allocation2 + $0x8] sm:$0xff] %v731_v50 }
 0x23a   : > { %736 = vst [vmem:[#allocation2 + $0x10] sm:$0xff] %v732_v53 }
 0x23b   : > { %737 = vst [vmem:[#allocation2 + $0x18] sm:$0xff] %v733_v54 }
 0x23c   : > { %v1088_v33 = vld [vmem:[%s1561_s5] ss:$0 sm:$0xff]  ;;  %v772_v58 = vlaneseq  ;;  %v763_v38 = vstv %s762_s1  ;;  %vm777_vm4 = vcmask 130112   ;;  %vm782_vm5 = vcmask 1041409  }
 0x23d   : > { %vm785_vm6 = vcmask 123904  }
 0x23e   : > { %v773_v59 = vand.u32 127, %v772_v58 }
 0x23f   : > { %v742_v42 = vld [vmem:[#allocation2] sm:$0xff] }
 0x240   : > { %v750_v44 = vmul.f32 %v1088_v33, %v742_v42  ;;  %v743_v10 = vld [vmem:[#allocation2 + $0x8] sm:$0xff]  ;;  %v775_v62 = vadd.s32 4294967288, %v773_v59 }
 0x241   : > { %v744_v32 = vld [vmem:[#allocation2 + $0x10] sm:$0xff]  ;;  %v751_v55 = vmul.f32 %v1088_v33, %v743_v10 }
 0x242   : > { %v752_v8 = vmul.f32 %v1088_v33, %v744_v32  ;;  %754 = vadd.xlane.f32.xlu0 %v750_v44  ;;  %v745_v9 = vld [vmem:[#allocation2 + $0x18] sm:$0xff] }
 0x243   : > { %v753_v11 = vmul.f32 %v1088_v33, %v745_v9 }
 0x244   : > { %758 = vadd.xlane.f32.xlu1 %v752_v8 }
 0x24a   : > { %756 = vadd.xlane.f32.xlu0 %v751_v55 }
 0x24c   : > { %760 = vadd.xlane.f32.xlu1 %v753_v11 }
 0x2b5   : > { %v755_v57 = vpop.xlane.xlu0 %754 }
 0x2b6   : > { %v764_v61 = vadd.f32 %v763_v38, %v755_v57 }
 0x2b7   : > { %v759_v56 = vpop.xlane.xlu1 %758 }
 0x2b8   : > { %v766_v60 = vadd.f32 %v763_v38, %v759_v56  ;;  %v774_v4 = vperm.slane %v764_v61, %v773_v59 }
 0x2ba   : > { %v779_v3 = vperm.slane %v766_v60, %v773_v59 }
 0x2bd   : > { %v757_v0 = vpop.xlane.xlu0 %756 }
 0x2be   : > { %v765_v2 = vadd.f32 %v763_v38, %v757_v0 }
 0x2bf   : > { %v761_v63 = vpop.xlane.xlu1 %760 }
 0x2c0   : > { %v767_v1 = vadd.f32 %v763_v38, %v761_v63  ;;  %v776_v6 = vperm.slane %v765_v2, %v775_v62 }
 0x2c2   : > { %v780_v5 = vperm.slane %v767_v1, %v775_v62  ;;  %v778_v12 = vsel %vm777_vm4, %v776_v6, %v774_v4 }
 0x2c4   : > { %v781_v7 = vsel %vm777_vm4, %v780_v5, %v779_v3 }
 0x2c5   : > { %v783_v13 = vsel %vm782_vm5, %v781_v7, %v778_v12 }
 0x2c6   : > { %786 = vst.msk [vmem:[#allocation10] sm:$0x3] %vm785_vm6, %v783_v13 }
 0x2c7 PF: > { %p1030_p7 = scmp.eq.s32.totalorder %s1321_s6, 1  ;;  %s1258_s9 = smov [#allocation10]  }
 0x2c8   : > { %s793_s22 = sshll.u32 %s1258_s9, 4  ;;  %s795_s25 = sshll.u32 %s1563_s7, 4  ;;  %s794_s22 = int_to_ptr.vmem [resolvable:$true] %s793_s22  ;;  %s796_s25 = int_to_ptr.hbm [resolvable:$true] %s795_s25 }
 0x2c9   : > { %1018 = dma.vmem_to_hbm [thread:$0]  (%p1030_p7), %s794_s22, 32, %s796_s25, [#allocation7]  }
 0x2ca   : > { %1234 = dma.done.wait (%p1030_p7), [#allocation7], 32  }
 0x2cb   : > { %1236 = vsyncadd (%p1030_p7), [#allocation7], 4294967264 }
 0x2cc PF: > { %p22_p11 = scmp.ge.s32.totalorder %s1324_s30, 4   ;;  %s1570_s26 = smov %s1243_s27 }
 0x2cd   : > { %s1571_s27 = smov %s1247_s28  ;;  %s1572_s28 = smov %s1334_s10 }
 0x2ce   : > { %s1573_s29 = smov %s1324_s30  ;;  %24 = sbr.rel (!%p22_p11) target bundleno = 9 (0x9), region = 112 }
 0x2d3   :  { %809 = vsyncpa [#allocation6], 1 }
 0x2d4   :  { %811 = vsyncpa [#allocation6 + $0x1], 1 }
 0x2d5   :  { %812 = vsyncpa [#allocation9], 1 }
 0x2d6   :  { %814 = vsyncpa [#allocation9 + $0x1], 1 }
 0x2d7   :  { %815 = vsyncpa [#allocation7], 1 }
 0x2d8   :  { %817 = vsyncpa [#allocation7 + $0x1], 1 }
 0x2d9   :  { %818 = vsyncmov [#allocation3] }
 0x2dc   :  { %s819_s6 = vpop.sfrf %818 }
 0x2dd   :  { %p975_p3 = scmp.ne.s32.totalorder %s819_s6, 0 }
 0x2df   :  { %823 = shalt.err (%p975_p3)  }

</bundles_post_ra>
